<compile_context>
chip_gen: v5e
topology: v5e:2x2
jax: 0.10.0
libtpu: 0.0.40
codegen_flags: <defaults>
</compile_context>

<pallas_src>
import functools
import math

import jax
import jax.numpy as jnp
from jax.experimental import pallas as pl
from jax.experimental.pallas import tpu as pltpu


def _round_up(x: int, m: int) -> int:
    return (x + m - 1) // m * m


def _vmem_capacity_bytes() -> int:
    """Per-core VMEM capacity; conservative 64 MiB (v7x) if the query fails."""
    try:
        info = pltpu.get_tpu_info()
        cap = int(getattr(info, "vmem_capacity_bytes", 0) or 0)
        if cap > 0:
            return cap
    except Exception:
        pass
    return 64 * 1024 * 1024


def _resident_spec(block_shape, index_map):
    """BlockSpec for an operand resident across the inner grid axis: single
    pipeline buffer (its second buffer would be dead VMEM)."""
    try:
        return pl.BlockSpec(block_shape, index_map, pipeline_mode=pl.Buffered(1))
    except Exception:
        # Older/newer API without pipeline_mode: fall back to default buffering.
        return pl.BlockSpec(block_shape, index_map)


def _ensemble_head_kernel(x_ref, w_ref, b_ref, o_ref):
    # x_ref: (tb, f_pad)        -- streamed: this member's feature slice of the batch tile
    # w_ref: (1, f_pad, c_pad)  -- resident across the inner batch axis (Buffered(1))
    # b_ref: (1, 1, c_pad)      -- f32 bias
    # o_ref: (tb, c_pad)        -- lane-dense output store (c_pad % 128 == 0)
    y = jnp.dot(x_ref[...], w_ref[0], preferred_element_type=jnp.float32)
    o_ref[...] = (y + b_ref[0]).astype(o_ref.dtype)


@functools.partial(jax.jit,
                   static_argnames=("n_members", "batch_tile", "stream_dtype"))
def ensemble_head_forward(x, weights, biases, *, n_members, batch_tile=1024,
                          stream_dtype=None):
    """x: (batch_size * n_members, in_features)
    weights: (n_members, n_classes, in_features)   (PyTorch Linear layout)
    biases:  (n_members, n_classes)
    stream_dtype: optional dtype (e.g. jnp.bfloat16) to stream x / W through HBM
        with; accumulation and bias add stay f32, output keeps x.dtype.
    returns: (batch_size * n_members, n_classes)
    """
    total, in_features = x.shape
    M = n_members
    batch_size = total // M
    n_classes = weights.shape[1]
    out_dtype = x.dtype

    f_pad = _round_up(in_features, 128)
    c_pad = _round_up(n_classes, 128)

    s_dtype = jnp.dtype(stream_dtype) if stream_dtype is not None else jnp.dtype(x.dtype)

    # ---- weight / bias prep: pad (class dim, and feature dim if unaligned),
    #      transpose once to the NN matmul layout, cast to the stream dtype.
    #      These are the small tensors; the cost is paid once per call. ----
    w = weights
    b = biases
    if c_pad != n_classes:
        w = jnp.pad(w, ((0, 0), (0, c_pad - n_classes), (0, 0)))
        b = jnp.pad(b, ((0, 0), (0, c_pad - n_classes)))
    if f_pad != in_features:
        w = jnp.pad(w, ((0, 0), (0, 0), (0, f_pad - in_features)))
    w_nn = jnp.transpose(w, (0, 2, 1)).astype(s_dtype)        # (M, f_pad, c_pad)
    b_e = b.astype(jnp.float32).reshape(M, 1, c_pad)

    # ---- x prep: cast for streaming; pad features only if F is unaligned
    #      (typical ViT widths 384/768/1024 hit the pad-free path). ----
    xs = x.astype(s_dtype)
    if f_pad != in_features:
        xs = jnp.pad(xs, ((0, 0), (0, f_pad - in_features)))
    # Row-major view (B*M, f_pad) -> (B, M*f_pad): member m lives in lanes
    # [m*f_pad, (m+1)*f_pad) of each row; the grid's member axis selects it.
    x2 = xs.reshape(batch_size, M * f_pad)

    # ---- generation-aware tile sizing ----
    cap = _vmem_capacity_bytes()
    budget = (3 * cap) // 8        # ~24 MiB on v7x (64 MiB VMEM), ~48 MiB on v5e/v6e (128 MiB)
    vmem_limit = (3 * cap) // 4    # ~48 MiB / ~96 MiB: leaves headroom for Mosaic scratch

    s_bytes = s_dtype.itemsize
    o_bytes = jnp.dtype(out_dtype).itemsize
    sub = 16 if s_bytes < 4 else 8   # bf16 packs 2 rows / sublane -> align tb to 16

    def vmem_estimate(tb_):
        x_t = 2 * tb_ * f_pad * s_bytes       # streamed: double-buffered
        o_t = 2 * tb_ * c_pad * o_bytes       # streamed: double-buffered
        w_t = 1 * f_pad * c_pad * s_bytes     # resident: single buffer (Buffered(1))
        b_t = 1 * c_pad * 4
        return x_t + o_t + w_t + b_t

    tb = min(batch_tile, batch_size)
    if tb < batch_size:
        tb = max(sub, (tb // sub) * sub)
    while tb > sub and vmem_estimate(tb) > budget:
        nt = tb // 2
        if nt >= 256:
            nt = (nt // 256) * 256            # MXU/DMA-friendly multiples on v6e/v7x
        else:
            nt = max(sub, (nt // sub) * sub)
        if nt == tb:
            break
        tb = nt

    n_bt = pl.cdiv(batch_size, tb)

    out2 = pl.pallas_call(
        _ensemble_head_kernel,
        out_shape=jax.ShapeDtypeStruct((batch_size, M * c_pad), out_dtype),
        grid_spec=pltpu.PrefetchScalarGridSpec(
            num_scalar_prefetch=0,
            # Member axis outer, batch axis inner: the weight tile's block index
            # is constant along the inner axis, so it is DMA'd once per member.
            grid=(M, n_bt),
            in_specs=[
                # x tile: each element read exactly once over the whole grid.
                pl.BlockSpec((tb, f_pad), lambda mt, bt: (bt, mt)),
                # weight / bias: resident across the batch axis, single-buffered.
                _resident_spec((1, f_pad, c_pad), lambda mt, bt: (mt, 0, 0)),
                _resident_spec((1, 1, c_pad), lambda mt, bt: (mt, 0, 0)),
            ],
            out_specs=pl.BlockSpec((tb, c_pad), lambda mt, bt: (bt, mt)),
        ),
        compiler_params=pltpu.CompilerParams(
            dimension_semantics=("parallel", "parallel"),
            vmem_limit_bytes=int(vmem_limit),
        ),
    )(x2, w_nn, b_e)

    # Free row-major view back to the PyTorch output layout, drop class padding.
    out = out2.reshape(batch_size * M, c_pad)
    if c_pad != n_classes:
        out = out[:, :n_classes]
    return out


def init_linear_params(key, n_members, in_features, n_classes):
    """Deterministic init mimicking nn.Linear default (Init_Head.DEFAULT):
    weight, bias ~ U(-1/sqrt(in_features), 1/sqrt(in_features))."""
    bound = 1.0 / math.sqrt(in_features)
    kw, kb = jax.random.split(key)
    weights = jax.random.uniform(kw, (n_members, n_classes, in_features),
                                 jnp.float32, -bound, bound)
    biases = jax.random.uniform(kb, (n_members, n_classes),
                                jnp.float32, -bound, bound)
    return weights, biases


def _reference(x, weights, biases, n_members):
    """Pure-JAX reference of the exact PyTorch forward semantics."""
    total, in_features = x.shape
    batch_size = total // n_members
    n_classes = weights.shape[1]
    x_e = jnp.moveaxis(x.reshape(batch_size, n_members, in_features), 1, 0)
    y = jnp.einsum("mbf,mcf->mbc", x_e, weights) + biases[:, None, :]
    return jnp.moveaxis(y, 0, 1).reshape(batch_size * n_members, n_classes)


if __name__ == "__main__":
    key = jax.random.PRNGKey(0)

    configs = [
        # (batch_size, n_members, in_features, n_classes, stream_dtype, atol)
        (16, 3, 128, 10, None, 1e-5),            # F lane-aligned, C padded 10 -> 128, exact f32
        (8, 2, 96, 7, None, 1e-5),               # F and C both padded, exact f32
        (32, 4, 256, 17, jnp.bfloat16, 2e-2),    # bf16 streaming (f32 accumulation)
    ]

    for i, (B, M, F, C, sdt, atol) in enumerate(configs):
        k = jax.random.fold_in(key, i)
        kx, kp = jax.random.split(k)
        x = jax.random.normal(kx, (B * M, F), jnp.float32)
        weights, biases = init_linear_params(kp, M, F, C)

        out = ensemble_head_forward(x, weights, biases, n_members=M,
                                    stream_dtype=sdt)
        out = jax.block_until_ready(out)

        ref = _reference(x, weights, biases, M)
        assert out.shape == (B * M, C), out.shape
        assert out.dtype == x.dtype, out.dtype
        assert jnp.allclose(out, ref, atol=atol, rtol=atol), \
            (i, float(jnp.max(jnp.abs(out - ref))))

    print("KERNEL_OK")
</pallas_src>

<mosaic_0001>
module attributes {stable_mosaic.version = 11 : i64} {
  func.func @_ensemble_head_kernel(%arg0: i32, %arg1: i32, %arg2: memref<16x128xf32, #tpu.memory_space<vmem>>, %arg3: memref<1x128x128xf32, #tpu.memory_space<vmem>>, %arg4: memref<1x1x128xf32, #tpu.memory_space<vmem>>, %arg5: memref<16x128xf32, #tpu.memory_space<vmem>>) attributes {dimension_semantics = [#tpu.dimension_semantics<parallel>, #tpu.dimension_semantics<parallel>], iteration_bounds = array<i64: 3, 1>, scalar_prefetch = 0 : i64, scratch_operands = 0 : i64, tpu.core_type = #tpu.core_type<tc>, window_params = [{transform_indices = @transform_0, window_bounds = array<i64: 16, 128>}, {pipeline_mode = #tpu.pipeline_mode<synchronous>, transform_indices = @transform_1, window_bounds = array<i64: 1, 128, 128>}, {pipeline_mode = #tpu.pipeline_mode<synchronous>, transform_indices = @transform_2, window_bounds = array<i64: 1, 1, 128>}, {transform_indices = @transform_3, window_bounds = array<i64: 16, 128>}]} {
    %c0 = arith.constant 0 : index
    %c0_0 = arith.constant 0 : index
    %0 = vector.load %arg2[%c0, %c0_0] : memref<16x128xf32, #tpu.memory_space<vmem>>, vector<16x128xf32>
    %c0_1 = arith.constant 0 : index
    %c0_2 = arith.constant 0 : index
    %c0_3 = arith.constant 0 : index
    %1 = vector.load %arg3[%c0_1, %c0_2, %c0_3] : memref<1x128x128xf32, #tpu.memory_space<vmem>>, vector<1x128x128xf32>
    %2 = vector.shape_cast %1 : vector<1x128x128xf32> to vector<128x128xf32>
    %cst = arith.constant dense<0.000000e+00> : vector<16x128xf32>
    %3 = tpu.matmul %0, %2, %cst {dimension_numbers = #tpu.dot_dimension_numbers<[1], [0], [0], [1], [0, 0, 1, 1], [], []>} : vector<16x128xf32>, vector<128x128xf32>, vector<16x128xf32> -> vector<16x128xf32>
    %c0_4 = arith.constant 0 : index
    %c0_5 = arith.constant 0 : index
    %c0_6 = arith.constant 0 : index
    %4 = vector.load %arg4[%c0_4, %c0_5, %c0_6] : memref<1x1x128xf32, #tpu.memory_space<vmem>>, vector<1x1x128xf32>
    %5 = vector.shape_cast %4 : vector<1x1x128xf32> to vector<1x128xf32>
    %6 = vector.broadcast %5 : vector<1x128xf32> to vector<16x128xf32>
    %7 = arith.addf %3, %6 : vector<16x128xf32>
    %c0_7 = arith.constant 0 : index
    %c0_8 = arith.constant 0 : index
    %8 = vector.load %arg5[%c0_7, %c0_8] : memref<16x128xf32, #tpu.memory_space<vmem>>, vector<16x128xf32>
    tpu.vector_store %arg5[%c0_7, %c0_8], %7 {strides = array<i32>} : memref<16x128xf32, #tpu.memory_space<vmem>>, vector<16x128xf32>,
    return
  }
  func.func @transform_0(%arg0: i32, %arg1: i32) -> (i32, i32) {
    %c0_i32 = arith.constant 0 : i32
    return %arg1, %arg0 : i32, i32
  }
  func.func @transform_1(%arg0: i32, %arg1: i32) -> (i32, i32, i32) {
    %c0_i32 = arith.constant 0 : i32
    %c0_i32_0 = arith.constant 0 : i32
    %c0_i32_1 = arith.constant 0 : i32
    return %arg0, %c0_i32, %c0_i32_0 : i32, i32, i32
  }
  func.func @transform_2(%arg0: i32, %arg1: i32) -> (i32, i32, i32) {
    %c0_i32 = arith.constant 0 : i32
    %c0_i32_0 = arith.constant 0 : i32
    %c0_i32_1 = arith.constant 0 : i32
    return %arg0, %c0_i32, %c0_i32_0 : i32, i32, i32
  }
  func.func @transform_3(%arg0: i32, %arg1: i32) -> (i32, i32) {
    %c0_i32 = arith.constant 0 : i32
    return %arg1, %arg0 : i32, i32
  }
}

</mosaic_0001>

<bundles_post_ra>
// kernel: ensemble_head_forward.1
= control target key start
LH: loop header
LB: loop body
LE: loop exit
PB: predicated region body
PF: predicated region fallthrough
CT: control target
= control target key end

     0   :  { %s584_s12 = smov 0   ;;  %s586_s13 = smov 0   ;;  %s691_s0 = inlined_call_operand.vmem [shape: f32[16,384], index: 0, kind: input, shape index: {}]   ;;  %s692_s1 = inlined_call_operand.vmem [shape: f32[3,128,128], index: 1, kind: input, shape index: {}]   ;;  %s693_s2 = inlined_call_operand.vmem [shape: f32[3,1,128], index: 2, kind: input, shape index: {}]   ;;  %s694_s3 = inlined_call_operand.vmem [shape: f32[16,384], index: 3, kind: output, shape index: {}]  }
   0x1   :  { %s588_s14 = smov 0   ;;  %s590_s15 = smov 0  }
   0x2   :  { %s592_s16 = smov 0  }
   0x3 LB: > { %s25_s17 = sadd.s32 1, %s558_s15  ;;  %s451_s18 = sadd.s32 4294967295, %s562_s16   ;;  %s562_s16 = sphi %s592_s16, %s13_s16   ;;  %s558_s15 = sphi %s590_s15, %s699_s15   ;;  %s554_s14 = sphi %s588_s14, %s698_s14   ;;  %s550_s13 = sphi %s586_s13, %s697_s13   ;;  %s546_s12 = sphi %s584_s12, %s696_s12  }
   0x4   : > { %p27_p0 = scmp.ge.s32.totalorder %s25_s17, 3  ;;  %p41_p1 = scmp.ne.s32.totalorder %s550_s13, %s546_s12 }
   0x5   : > { %p42_p2 = scmp.eq.s32.totalorder %s562_s16, 0  ;;  %p125_p4 = scmp.eq.s32.totalorder %s451_s18, 2 }
   0x6   : > { %s701_s17 = smov (%p27_p0, %s25_s17), 0  ;;  %s34_s20 = sadd.s32 1, %s550_s13 }
   0x7   : > { %p43_p3 = por %p42_p2, %p41_p1  ;;  %s30_s19 = ssub.s32 %s558_s15, %s701_s17 }
   0x8   : > { %p32_p5 = scmp.eq.s32.totalorder %s30_s19, 0  ;;  %p619_p6 = por %p125_p4, %p41_p1 }
   0x9   : > { %p454_p7 = scmp.ge.s32.totalorder %s562_s16, 3 }
   0xa   : > { %s624_s22 = scalar_select %p32_p5, %s550_s13, %s34_s20  }
   0xb   : > { %161 = sbr.rel (%p454_p7) target bundleno = 22 (0x16), region = 24 }
  0x10   : > { %164 = sbr.rel (!%p43_p3) target bundleno = 22 (0x16), region = 28  ;;  %s166_s23 = sand.u32 (%p43_p3), 1, %s550_s13  }
  0x11   : > { %s456_s24 = sshll.u32 (%p43_p3), %s558_s15, 3  ;;  %s455_s25 = sshll.u32 (%p43_p3), %s166_s23, 4 }
  0x12   : > { %s173_s28 = scalar_lea.vmem (%p43_p3), %s691_s0, %s456_s24  ;;  %s168_s29 = scalar_lea.vmem (%p43_p3), [#allocation2], %s455_s25 }
  0x13   : > { %v204_v0 = vld [vmem:[%s173_s28] sm:$0xff] (%p43_p3)  ;;  %v206_v1 = vld [vmem:[%s173_s28 + $0x18] sm:$0xff] (%p43_p3) }
  0x14   : > { %205 = vst [vmem:[%s168_s29] sm:$0xff] (%p43_p3), %v204_v0 }
  0x15   : > { %207 = vst [vmem:[%s168_s29 + $0x8] sm:$0xff] %v206_v1 }
  0x16 PF: > { %p457_p8 = scmp.ge.s32.totalorder %s562_s16, 1  ;;  %p212_p9 = scmp.lt.s32.totalorder %s562_s16, 4 }
  0x18   : > { %p213_p10 = pnand %p457_p8, %p212_p9 }
  0x19   : > { %p250_p11 = scmp.lt.s32.totalorder (!%p213_p10), %s554_s14, 2  ;;  %s219_s11 = sand.u32 (!%p213_p10), 1, %s546_s12  }
  0x1a   : > { %216 = sbr.rel (%p213_p10) target bundleno = 205 (0xcd), region = 66  ;;  %s458_s18 = sshll.u32 (!%p213_p10), %s219_s11, 4 }
  0x1b   : > { %s221_s19 = scalar_lea.vmem (!%p213_p10), [#allocation2], %s458_s18  ;;  %s248_s23 = scalar_lea.vmem (!%p213_p10), [#allocation3], %s458_s18 }
  0x1f   : > { %s636_s30 = scalar_select %p250_p11, %s554_s14, 2  ;;  %v259_v18 = vld [vmem:[%s221_s19] sm:$0xff]  ;;  %v260_v19 = vld [vmem:[%s221_s19 + $0x8] sm:$0xff] }
  0x20   : > { %s463_s24 = sshll.u32 (%p619_p6), %s554_s14, 3 }
  0x21   : > { %s466_s4 = sshll.u32 %s636_s30, 7  ;;  %s257_s7 = scalar_lea.vmem %s693_s2, %s636_s30 }
  0x22   : > { %s646_s10 = scalar_lea.vmem %s692_s1, %s466_s4  ;;  %v523_v20 = vld [vmem:[%s257_s7] ss:$0 sm:$0xff]  ;;  %s317_s27 = scalar_lea.vmem (%p619_p6), %s694_s3, %s463_s24 }
  0x23   : > { %v276_v2 = vld [vmem:[%s646_s10 + $0x78] sm:$0xff]  ;;  %v275_v3 = vld [vmem:[%s646_s10 + $0x70] sm:$0xff]  ;;  %v274_v4 = vld [vmem:[%s646_s10 + $0x68] sm:$0xff] }
  0x24   : > { %281 = vmatpush.msra.mxu0 %v276_v2  ;;  %467 = vmatpush.msra.mxu1 %v276_v2  ;;  %v273_v5 = vld [vmem:[%s646_s10 + $0x60] sm:$0xff]  ;;  %v272_v6 = vld [vmem:[%s646_s10 + $0x58] sm:$0xff]  ;;  %v271_v7 = vld [vmem:[%s646_s10 + $0x50] sm:$0xff] }
  0x25   : > { %v270_v8 = vld [vmem:[%s646_s10 + $0x48] sm:$0xff]  ;;  %v269_v9 = vld [vmem:[%s646_s10 + $0x40] sm:$0xff]  ;;  %v268_v10 = vld [vmem:[%s646_s10 + $0x38] sm:$0xff] }
  0x26   : > { %282 = vmatpush.msra.mxu0 %v275_v3  ;;  %468 = vmatpush.msra.mxu1 %v275_v3  ;;  %v267_v11 = vld [vmem:[%s646_s10 + $0x30] sm:$0xff]  ;;  %v266_v12 = vld [vmem:[%s646_s10 + $0x28] sm:$0xff]  ;;  %v265_v13 = vld [vmem:[%s646_s10 + $0x20] sm:$0xff] }
  0x27   : > { %v264_v14 = vld [vmem:[%s646_s10 + $0x18] sm:$0xff]  ;;  %v263_v15 = vld [vmem:[%s646_s10 + $0x10] sm:$0xff]  ;;  %v262_v16 = vld [vmem:[%s646_s10 + $0x8] sm:$0xff] }
  0x28   : > { %283 = vmatpush.msra.mxu0 %v274_v4  ;;  %469 = vmatpush.msra.mxu1 %v274_v4  ;;  %v261_v17 = vld [vmem:[%s646_s10] sm:$0xff] }
  0x2a   : > { %284 = vmatpush.msra.mxu0 %v273_v5  ;;  %470 = vmatpush.msra.mxu1 %v273_v5 }
  0x2c   : > { %285 = vmatpush.msra.mxu0 %v272_v6  ;;  %471 = vmatpush.msra.mxu1 %v272_v6 }
  0x2e   : > { %286 = vmatpush.msra.mxu0 %v271_v7  ;;  %472 = vmatpush.msra.mxu1 %v271_v7 }
  0x30   : > { %287 = vmatpush.msra.mxu0 %v270_v8  ;;  %473 = vmatpush.msra.mxu1 %v270_v8 }
  0x32   : > { %288 = vmatpush.msra.mxu0 %v269_v9  ;;  %474 = vmatpush.msra.mxu1 %v269_v9 }
  0x34   : > { %289 = vmatpush.msra.mxu0 %v268_v10  ;;  %475 = vmatpush.msra.mxu1 %v268_v10 }
  0x36   : > { %290 = vmatpush.msra.mxu0 %v267_v11  ;;  %476 = vmatpush.msra.mxu1 %v267_v11 }
  0x38   : > { %291 = vmatpush.msra.mxu0 %v266_v12  ;;  %477 = vmatpush.msra.mxu1 %v266_v12 }
  0x3a   : > { %292 = vmatpush.msra.mxu0 %v265_v13  ;;  %478 = vmatpush.msra.mxu1 %v265_v13 }
  0x3c   : > { %293 = vmatpush.msra.mxu0 %v264_v14  ;;  %479 = vmatpush.msra.mxu1 %v264_v14 }
  0x3e   : > { %294 = vmatpush.msra.mxu0 %v263_v15  ;;  %480 = vmatpush.msra.mxu1 %v263_v15 }
  0x40   : > { %295 = vmatpush.msra.mxu0 %v262_v16  ;;  %481 = vmatpush.msra.mxu1 %v262_v16 }
  0x42   : > { %296 = vmatpush.msra.mxu0 %v261_v17  ;;  %482 = vmatpush.msra.mxu1 %v261_v17 }
  0x43   : > { %297 = vmatmul.f32.vlgmr.msra.gmra.mxu0 %v259_v18  ;;  %300 = vmatmul.f32.vlgmr.msra.gmra.mxu1 %v260_v19 }
  0xc0   : > { %v298_v21 = vpop.f32.mrf.mxu0  ;;  %v301_v22 = vpop.f32.mrf.mxu1  ;;  %312 = sbr.rel (!%p619_p6) target bundleno = 205 (0xcd), region = 74 }
  0xc1   : > { %v299_v23 = vadd.f32 %v523_v20, %v298_v21  ;;  %v302_v24 = vadd.f32 %v523_v20, %v301_v22 }
  0xc3   : > { %304 = vst [vmem:[%s248_s23] sm:$0xff] %v299_v23 }
  0xc4   : > { %305 = vst [vmem:[%s248_s23 + $0x8] sm:$0xff] %v302_v24 }
  0xca   : > { %v348_v25 = vld [vmem:[%s248_s23] sm:$0xff] }
  0xcb   : > { %v350_v26 = vld [vmem:[%s248_s23 + $0x8] sm:$0xff]  ;;  %349 = vst [vmem:[%s317_s27] sm:$0xff] %v348_v25 }
  0xcc   : > { %351 = vst [vmem:[%s317_s27 + $0x18] sm:$0xff] %v350_v26 }
  0xcd PF: > { %s13_s16 = sadd.s32 1, %s562_s16   ;;  %s696_s12 = smov %s550_s13 }
  0xce   : > { %p10_p12 = scmp.ge.s32.totalorder %s13_s16, 5   ;;  %s697_s13 = smov %s624_s22 }
  0xcf   : > { %s698_s14 = smov %s558_s15  ;;  %s699_s15 = smov %s701_s17 }
  0xd0   :  { %12 = sbr.rel (!%p10_p12) target bundleno = 3 (0x3), region = 149 }

</bundles_post_ra>
